<compile_context>
chip_gen: v7x
topology: tpu7x:2x2x1
jax: 0.10.0
libtpu: 0.0.40
codegen_flags: <defaults>
</compile_context>

<pallas_src>
import functools

import jax
import jax.numpy as jnp
from jax import lax
from jax.experimental import pallas as pl
from jax.experimental.pallas import tpu as pltpu

GROUP_SIZE = 32
EPS = 1e-5


def norm_block_kernel(x_ref, cond_ref, gamma_ref, beta_ref, w_ref, b_ref,
                      gmap_ref, gmap_t_ref, out_ref, *, inv_n, eps):
    x = x_ref[...]                                           # (Bt, C, HW) f32

    # ---- GroupNorm statistics: single pass (E[x^2] - E[x]^2), f32 accumulate -------
    ch_sum = jnp.sum(x, axis=-1)                             # (Bt, C)  lane reduce (XLU)
    ch_sqsum = jnp.sum(x * x, axis=-1)                       # (Bt, C)  lane reduce (XLU)
    g_mean = jnp.dot(ch_sum, gmap_ref[...],
                     preferred_element_type=jnp.float32) * inv_n         # (Bt, G)
    g_m2 = jnp.dot(ch_sqsum, gmap_ref[...],
                   preferred_element_type=jnp.float32) * inv_n           # (Bt, G)
    g_var = g_m2 - g_mean * g_mean                           # biased var (matches PyTorch)
    g_rstd = lax.rsqrt(g_var + eps)                          # (Bt, G)  EUP
    mean_c = jnp.dot(g_mean, gmap_t_ref[...],
                     preferred_element_type=jnp.float32)                 # (Bt, C)
    rstd_c = jnp.dot(g_rstd, gmap_t_ref[...],
                     preferred_element_type=jnp.float32)                 # (Bt, C)

    # ---- conditioning Linear: y = cond @ W + b (fused, MXU) -------------------------
    y = jnp.dot(cond_ref[...], w_ref[...],
                preferred_element_type=jnp.float32) + b_ref[...]         # (Bt, C)

    # ---- fused affine + bias-add epilogue:  out = x * scale + shift -----------------
    # (x - mean) * rstd * gamma + beta + y  ==  x * scale + shift  (one FMA sweep over x)
    scale = gamma_ref[...] * rstd_c                          # (Bt, C)
    shift = beta_ref[...] + y - mean_c * scale               # (Bt, C)
    out_ref[...] = (x * scale[:, :, None] + shift[:, :, None]).astype(out_ref.dtype)


def _pick_batch_tile(batch, c, hw, cond_ch, itemsize=4, target_bytes=8 << 20):
    """Largest batch tile whose double-buffered (x + out + cond) footprint ~ target_bytes."""
    per_row = 2 * (2 * c * hw * itemsize) + 2 * (cond_ch * itemsize)
    rows = max(1, target_bytes // per_row)
    if rows >= batch:
        return batch
    # When tiling, bt is the sublane axis of the (bt, cond_ch) cond block -> multiple of 8.
    return max(8, (rows // 8) * 8)


def norm_block_forward(x, cond, params, *, eps=EPS):
    """x: (B, C, H, W) f32, cond: (B, cond_channels) f32 -> (B, C, H, W) f32."""
    B, C, H, W = x.shape
    cond_ch = cond.shape[1]
    HW = H * W
    G = max(C // GROUP_SIZE, 1)
    Cg = C // G

    gamma = params["gamma"].reshape(1, C).astype(jnp.float32)
    beta = params["beta"].reshape(1, C).astype(jnp.float32)
    w_ln = params["w_ln"].astype(jnp.float32)                # (cond_channels, C), y = cond @ W + b
    b_ln = params["b_ln"].reshape(1, C).astype(jnp.float32)

    # (C, G) one-hot group membership: gmap[c, g] = 1 iff channel c belongs to group g.
    gmap = (jnp.arange(C)[:, None] // Cg == jnp.arange(G)[None, :]).astype(jnp.float32)
    gmap_t = gmap.T                                          # (G, C)

    x2 = x.reshape(B, C, HW)
    bt = _pick_batch_tile(B, C, HW, cond_ch)
    grid = (pl.cdiv(B, bt),)

    # VMEM budget: double-buffered x/out/cond tiles + resident weights + headroom.
    tile_bytes = 2 * (2 * bt * C * HW * 4) + 2 * (bt * cond_ch * 4)
    weight_bytes = 4 * (4 * C + cond_ch * C + 2 * C * G)
    vmem_limit = int(min(1.5 * (tile_bytes + weight_bytes) + (2 << 20), 48 << 20))

    kernel = functools.partial(norm_block_kernel, inv_n=1.0 / (Cg * HW), eps=eps)

    out = pl.pallas_call(
        kernel,
        out_shape=jax.ShapeDtypeStruct((B, C, HW), jnp.float32),
        grid=grid,
        in_specs=[
            pl.BlockSpec((bt, C, HW), lambda i: (i, 0, 0)),   # x        (batch-tiled)
            pl.BlockSpec((bt, cond_ch), lambda i: (i, 0)),    # cond     (batch-tiled)
            pl.BlockSpec((1, C), lambda i: (0, 0)),           # gamma    (resident)
            pl.BlockSpec((1, C), lambda i: (0, 0)),           # beta     (resident)
            pl.BlockSpec((cond_ch, C), lambda i: (0, 0)),     # w_ln     (resident)
            pl.BlockSpec((1, C), lambda i: (0, 0)),           # b_ln     (resident)
            pl.BlockSpec((C, G), lambda i: (0, 0)),           # group map
            pl.BlockSpec((G, C), lambda i: (0, 0)),           # group map^T
        ],
        out_specs=pl.BlockSpec((bt, C, HW), lambda i: (i, 0, 0)),
        compiler_params=pltpu.CompilerParams(
            dimension_semantics=("parallel",),
            vmem_limit_bytes=vmem_limit,
        ),
    )(x2, cond, gamma, beta, w_ln, b_ln, gmap, gmap_t)

    return out.reshape(B, C, H, W)


def reference_forward(x, cond, params, *, eps=EPS):
    """Pure-JAX replica of the PyTorch NormBlock forward, for validation."""
    B, C, H, W = x.shape
    G = max(C // GROUP_SIZE, 1)
    xg = x.reshape(B, G, -1)
    mean = xg.mean(-1, keepdims=True)
    var = ((xg - mean) ** 2).mean(-1, keepdims=True)
    xn = ((xg - mean) / jnp.sqrt(var + eps)).reshape(B, C, H, W)
    xn = xn * params["gamma"][None, :, None, None] + params["beta"][None, :, None, None]
    y = cond @ params["w_ln"] + params["b_ln"]
    return xn + y[:, :, None, None]


if __name__ == "__main__":
    B = 2
    in_channels = 64          # -> max(64 // 32, 1) = 2 groups
    cond_channels = 32
    H = W = 16

    key = jax.random.PRNGKey(0)
    kx, kc, kg, kb, kw, kbl = jax.random.split(key, 6)

    params = {
        "gamma": 1.0 + 0.1 * jax.random.normal(kg, (in_channels,), jnp.float32),
        "beta": 0.1 * jax.random.normal(kb, (in_channels,), jnp.float32),
        "w_ln": 0.05 * jax.random.normal(kw, (cond_channels, in_channels), jnp.float32),
        "b_ln": 0.05 * jax.random.normal(kbl, (in_channels,), jnp.float32),
    }
    x = jax.random.normal(kx, (B, in_channels, H, W), jnp.float32)
    cond = jax.random.normal(kc, (B, cond_channels), jnp.float32)

    out = jax.block_until_ready(norm_block_forward(x, cond, params))
    ref = reference_forward(x, cond, params)

    assert out.shape == (B, in_channels, H, W)
    assert jnp.allclose(out, ref, atol=1e-4, rtol=1e-4), (
        "Pallas output mismatch vs reference, max abs err = "
        f"{float(jnp.max(jnp.abs(out - ref)))}")

    print("KERNEL_OK")
</pallas_src>

<mosaic_0001>
module attributes {stable_mosaic.version = 11 : i64} {
  func.func @norm_block_kernel(%arg0: i32, %arg1: memref<2x64x256xf32, #tpu.memory_space<vmem>>, %arg2: memref<2x32xf32, #tpu.memory_space<vmem>>, %arg3: memref<1x64xf32, #tpu.memory_space<vmem>>, %arg4: memref<1x64xf32, #tpu.memory_space<vmem>>, %arg5: memref<32x64xf32, #tpu.memory_space<vmem>>, %arg6: memref<1x64xf32, #tpu.memory_space<vmem>>, %arg7: memref<64x2xf32, #tpu.memory_space<vmem>>, %arg8: memref<2x64xf32, #tpu.memory_space<vmem>>, %arg9: memref<2x64x256xf32, #tpu.memory_space<vmem>>) attributes {dimension_semantics = [#tpu.dimension_semantics<parallel>], iteration_bounds = array<i64: 1>, scalar_prefetch = 0 : i64, scratch_operands = 0 : i64, tpu.core_type = #tpu.core_type<tc>, window_params = [{transform_indices = @transform_0, window_bounds = array<i64: 2, 64, 256>}, {transform_indices = @transform_1, window_bounds = array<i64: 2, 32>}, {pipeline_mode = #tpu.pipeline_mode<synchronous>, transform_indices = @transform_2, window_bounds = array<i64: 1, 64>}, {pipeline_mode = #tpu.pipeline_mode<synchronous>, transform_indices = @transform_3, window_bounds = array<i64: 1, 64>}, {pipeline_mode = #tpu.pipeline_mode<synchronous>, transform_indices = @transform_4, window_bounds = array<i64: 32, 64>}, {pipeline_mode = #tpu.pipeline_mode<synchronous>, transform_indices = @transform_5, window_bounds = array<i64: 1, 64>}, {pipeline_mode = #tpu.pipeline_mode<synchronous>, transform_indices = @transform_6, window_bounds = array<i64: 64, 2>}, {pipeline_mode = #tpu.pipeline_mode<synchronous>, transform_indices = @transform_7, window_bounds = array<i64: 2, 64>}, {transform_indices = @transform_8, window_bounds = array<i64: 2, 64, 256>}]} {
    %c0 = arith.constant 0 : index
    %c0_0 = arith.constant 0 : index
    %c0_1 = arith.constant 0 : index
    %0 = vector.load %arg1[%c0, %c0_0, %c0_1] : memref<2x64x256xf32, #tpu.memory_space<vmem>>, vector<2x64x256xf32>
    %cst = arith.constant dense<0.000000e+00> : vector<2x64xf32>
    %1 = vector.multi_reduction <add>, %0, %cst [2] : vector<2x64x256xf32> to vector<2x64xf32>
    %2 = arith.mulf %0, %0 : vector<2x64x256xf32>
    %cst_2 = arith.constant dense<0.000000e+00> : vector<2x64xf32>
    %3 = vector.multi_reduction <add>, %2, %cst_2 [2] : vector<2x64x256xf32> to vector<2x64xf32>
    %c0_3 = arith.constant 0 : index
    %c0_4 = arith.constant 0 : index
    %4 = vector.load %arg7[%c0_3, %c0_4] : memref<64x2xf32, #tpu.memory_space<vmem>>, vector<64x2xf32>
    %cst_5 = arith.constant dense<0.000000e+00> : vector<2x2xf32>
    %5 = tpu.matmul %1, %4, %cst_5 {dimension_numbers = #tpu.dot_dimension_numbers<[1], [0], [0], [1], [0, 0, 1, 1], [], []>} : vector<2x64xf32>, vector<64x2xf32>, vector<2x2xf32> -> vector<2x2xf32>
    %cst_6 = arith.constant 1.22070313E-4 : f32
    %6 = vector.broadcast %cst_6 : f32 to vector<2x2xf32>
    %7 = arith.mulf %5, %6 : vector<2x2xf32>
    %c0_7 = arith.constant 0 : index
    %c0_8 = arith.constant 0 : index
    %8 = vector.load %arg7[%c0_7, %c0_8] : memref<64x2xf32, #tpu.memory_space<vmem>>, vector<64x2xf32>
    %cst_9 = arith.constant dense<0.000000e+00> : vector<2x2xf32>
    %9 = tpu.matmul %3, %8, %cst_9 {dimension_numbers = #tpu.dot_dimension_numbers<[1], [0], [0], [1], [0, 0, 1, 1], [], []>} : vector<2x64xf32>, vector<64x2xf32>, vector<2x2xf32> -> vector<2x2xf32>
    %cst_10 = arith.constant 1.22070313E-4 : f32
    %10 = vector.broadcast %cst_10 : f32 to vector<2x2xf32>
    %11 = arith.mulf %9, %10 : vector<2x2xf32>
    %12 = arith.mulf %7, %7 : vector<2x2xf32>
    %13 = arith.subf %11, %12 : vector<2x2xf32>
    %cst_11 = arith.constant 9.99999974E-6 : f32
    %14 = vector.broadcast %cst_11 : f32 to vector<2x2xf32>
    %15 = arith.addf %13, %14 : vector<2x2xf32>
    %16 = math.rsqrt %15 : vector<2x2xf32>
    %c0_12 = arith.constant 0 : index
    %c0_13 = arith.constant 0 : index
    %17 = vector.load %arg8[%c0_12, %c0_13] : memref<2x64xf32, #tpu.memory_space<vmem>>, vector<2x64xf32>
    %cst_14 = arith.constant dense<0.000000e+00> : vector<2x64xf32>
    %18 = tpu.matmul %7, %17, %cst_14 {dimension_numbers = #tpu.dot_dimension_numbers<[1], [0], [0], [1], [0, 0, 1, 1], [], []>} : vector<2x2xf32>, vector<2x64xf32>, vector<2x64xf32> -> vector<2x64xf32>
    %c0_15 = arith.constant 0 : index
    %c0_16 = arith.constant 0 : index
    %19 = vector.load %arg8[%c0_15, %c0_16] : memref<2x64xf32, #tpu.memory_space<vmem>>, vector<2x64xf32>
    %cst_17 = arith.constant dense<0.000000e+00> : vector<2x64xf32>
    %20 = tpu.matmul %16, %19, %cst_17 {dimension_numbers = #tpu.dot_dimension_numbers<[1], [0], [0], [1], [0, 0, 1, 1], [], []>} : vector<2x2xf32>, vector<2x64xf32>, vector<2x64xf32> -> vector<2x64xf32>
    %c0_18 = arith.constant 0 : index
    %c0_19 = arith.constant 0 : index
    %21 = vector.load %arg2[%c0_18, %c0_19] : memref<2x32xf32, #tpu.memory_space<vmem>>, vector<2x32xf32>
    %c0_20 = arith.constant 0 : index
    %c0_21 = arith.constant 0 : index
    %22 = vector.load %arg5[%c0_20, %c0_21] : memref<32x64xf32, #tpu.memory_space<vmem>>, vector<32x64xf32>
    %cst_22 = arith.constant dense<0.000000e+00> : vector<2x64xf32>
    %23 = tpu.matmul %21, %22, %cst_22 {dimension_numbers = #tpu.dot_dimension_numbers<[1], [0], [0], [1], [0, 0, 1, 1], [], []>} : vector<2x32xf32>, vector<32x64xf32>, vector<2x64xf32> -> vector<2x64xf32>
    %c0_23 = arith.constant 0 : index
    %c0_24 = arith.constant 0 : index
    %24 = vector.load %arg6[%c0_23, %c0_24] : memref<1x64xf32, #tpu.memory_space<vmem>>, vector<1x64xf32>
    %25 = vector.broadcast %24 : vector<1x64xf32> to vector<2x64xf32>
    %26 = arith.addf %23, %25 : vector<2x64xf32>
    %c0_25 = arith.constant 0 : index
    %c0_26 = arith.constant 0 : index
    %27 = vector.load %arg3[%c0_25, %c0_26] : memref<1x64xf32, #tpu.memory_space<vmem>>, vector<1x64xf32>
    %28 = vector.broadcast %27 : vector<1x64xf32> to vector<2x64xf32>
    %29 = arith.mulf %28, %20 : vector<2x64xf32>
    %c0_27 = arith.constant 0 : index
    %c0_28 = arith.constant 0 : index
    %30 = vector.load %arg4[%c0_27, %c0_28] : memref<1x64xf32, #tpu.memory_space<vmem>>, vector<1x64xf32>
    %31 = vector.broadcast %30 : vector<1x64xf32> to vector<2x64xf32>
    %32 = arith.addf %31, %26 : vector<2x64xf32>
    %33 = arith.mulf %18, %29 : vector<2x64xf32>
    %34 = arith.subf %32, %33 : vector<2x64xf32>
    %35 = vector.shape_cast %29 : vector<2x64xf32> to vector<2x64x1xf32>
    %36 = vector.broadcast %35 : vector<2x64x1xf32> to vector<2x64x256xf32>
    %37 = arith.mulf %0, %36 : vector<2x64x256xf32>
    %38 = vector.shape_cast %34 : vector<2x64xf32> to vector<2x64x1xf32>
    %39 = vector.broadcast %38 : vector<2x64x1xf32> to vector<2x64x256xf32>
    %40 = arith.addf %37, %39 : vector<2x64x256xf32>
    %c0_29 = arith.constant 0 : index
    %c0_30 = arith.constant 0 : index
    %c0_31 = arith.constant 0 : index
    %41 = vector.load %arg9[%c0_29, %c0_30, %c0_31] : memref<2x64x256xf32, #tpu.memory_space<vmem>>, vector<2x64x256xf32>
    tpu.vector_store %arg9[%c0_29, %c0_30, %c0_31], %40 {strides = array<i32>} : memref<2x64x256xf32, #tpu.memory_space<vmem>>, vector<2x64x256xf32>,
    return
  }
  func.func @transform_0(%arg0: i32) -> (i32, i32, i32) {
    %c0_i32 = arith.constant 0 : i32
    %c0_i32_0 = arith.constant 0 : i32
    %c0_i32_1 = arith.constant 0 : i32
    return %arg0, %c0_i32, %c0_i32_0 : i32, i32, i32
  }
  func.func @transform_1(%arg0: i32) -> (i32, i32) {
    %c0_i32 = arith.constant 0 : i32
    %c0_i32_0 = arith.constant 0 : i32
    return %arg0, %c0_i32 : i32, i32
  }
  func.func @transform_2(%arg0: i32) -> (i32, i32) {
    %c0_i32 = arith.constant 0 : i32
    %c0_i32_0 = arith.constant 0 : i32
    %c0_i32_1 = arith.constant 0 : i32
    return %c0_i32, %c0_i32_0 : i32, i32
  }
  func.func @transform_3(%arg0: i32) -> (i32, i32) {
    %c0_i32 = arith.constant 0 : i32
    %c0_i32_0 = arith.constant 0 : i32
    %c0_i32_1 = arith.constant 0 : i32
    return %c0_i32, %c0_i32_0 : i32, i32
  }
  func.func @transform_4(%arg0: i32) -> (i32, i32) {
    %c0_i32 = arith.constant 0 : i32
    %c0_i32_0 = arith.constant 0 : i32
    %c0_i32_1 = arith.constant 0 : i32
    return %c0_i32, %c0_i32_0 : i32, i32
  }
  func.func @transform_5(%arg0: i32) -> (i32, i32) {
    %c0_i32 = arith.constant 0 : i32
    %c0_i32_0 = arith.constant 0 : i32
    %c0_i32_1 = arith.constant 0 : i32
    return %c0_i32, %c0_i32_0 : i32, i32
  }
  func.func @transform_6(%arg0: i32) -> (i32, i32) {
    %c0_i32 = arith.constant 0 : i32
    %c0_i32_0 = arith.constant 0 : i32
    %c0_i32_1 = arith.constant 0 : i32
    return %c0_i32, %c0_i32_0 : i32, i32
  }
  func.func @transform_7(%arg0: i32) -> (i32, i32) {
    %c0_i32 = arith.constant 0 : i32
    %c0_i32_0 = arith.constant 0 : i32
    %c0_i32_1 = arith.constant 0 : i32
    return %c0_i32, %c0_i32_0 : i32, i32
  }
  func.func @transform_8(%arg0: i32) -> (i32, i32, i32) {
    %c0_i32 = arith.constant 0 : i32
    %c0_i32_0 = arith.constant 0 : i32
    %c0_i32_1 = arith.constant 0 : i32
    return %arg0, %c0_i32, %c0_i32_0 : i32, i32, i32
  }
}

</mosaic_0001>

<bundles_post_ra>
// kernel: tpu_custom_call.1
= control target key start
LH: loop header
LB: loop body
LE: loop exit
PB: predicated region body
PF: predicated region fallthrough
CT: control target
= control target key end

     0   :  { %13 = vsyncpa [#allocation3], 0  ;;  %s1751_s0 = inlined_call_operand.hbm [shape: f32[2,64,256], index: 0, kind: input, shape index: {}]   ;;  %s1752_s1 = inlined_call_operand.vmem [shape: f32[2,32], index: 1, kind: input, shape index: {}]   ;;  %s1753_s2 = inlined_call_operand.vmem [shape: f32[1,64], index: 2, kind: input, shape index: {}]   ;;  %s1754_s3 = inlined_call_operand.vmem [shape: f32[1,64], index: 3, kind: input, shape index: {}]   ;;  %s1755_s4 = inlined_call_operand.vmem [shape: f32[32,64], index: 4, kind: input, shape index: {}]   ;;  %s1756_s5 = inlined_call_operand.vmem [shape: f32[1,64], index: 5, kind: input, shape index: {}]   ;;  %s1757_s6 = inlined_call_operand.vmem [shape: f32[64,2], index: 6, kind: input, shape index: {}]   ;;  %s1758_s7 = inlined_call_operand.vmem [shape: f32[2,64], index: 7, kind: input, shape index: {}]   ;;  %s1759_s8 = inlined_call_operand.hbm [shape: f32[2,64,256], index: 8, kind: output, shape index: {}]  }
   0x1   :  { %14 = vsyncpa [#allocation4], 0  ;;  %s1262_s27 = smov [#allocation2]   ;;  %s1214_s9 = scalar_lea.hbm %s1751_s0, 4096 }
   0x2   :  { %s20_s28 = sshll.u32 %s1262_s27, 4  ;;  %p1215_p0 = scmp.ne.s32.totalorder %s1751_s0, %s1214_s9  ;;  %s21_s28 = int_to_ptr.vmem [resolvable:$true] %s20_s28 }
   0x3   :  { %p1218_p1 = scmp.lt.u32.totalorder %s1214_s9, %s1751_s0 }
   0x5   :  { %p1220_p2 = pnand %p1218_p1, %p1215_p0 }
   0x7   :  { %1223 = shalt.err (!%p1220_p2)
}
   0x8   :  { %s1224_s14 = scalar_lea.vmem %s21_s28, 4096  ;;  %p1229_p4 = scmp.lt.s32.totalorder %s21_s28, %s21_s28 }
   0x9   :  { %p1225_p3 = scmp.ne.s32.totalorder %s21_s28, %s1224_s14  ;;  %p1230_p5 = scmp.lt.s32.totalorder %s1224_s14, %s1224_s14 }
   0xb   :  { %p1231_p6 = por %p1230_p5, %p1229_p4 }
   0xd   :  { %p1232_p7 = pnand %p1231_p6, %p1225_p3 }
   0xf   :  { %1235 = shalt.err (!%p1232_p7)
}
  0x10   :  { %s1263_s15 = smov 256   ;;  %s1264_s16 = smov 16  }
  0x11   :  { %26 = dma.hbm_to_vmem [thread:$0]  %s1751_s0, 4096, %s21_s28, [#allocation3], %s1263_s15, %s1263_s15, %s1264_s16  }
  0x12   :  { %1258 = dma.done.wait [#allocation3], 4096  }
  0x13   :  { %1259 = vsyncadd [#allocation3], 4294963200  ;;  %v1329_v0 = vld [vmem:[#allocation2 + $0x80] sm:$0xff]  ;;  %v1331_v1 = vld [vmem:[#allocation2 + $0x88] sm:$0xff]  ;;  %vm1266_vm0 = vmmov 0   ;;  %vm239_vm1 = vcmask 130112  }
  0x14   :  { %v1333_v2 = vld [vmem:[#allocation2] sm:$0xff]  ;;  %v100_v3 = vadd.f32 %v1331_v1, %v1329_v0  ;;  %v1337_v4 = vld [vmem:[#allocation2 + $0x8] sm:$0xff]  ;;  %v1339_v5 = vld [vmem:[#allocation2 + $0x90] sm:$0xff]  ;;  %v140_v32 = vmul.f32 %v1329_v0, %v1329_v0  ;;  %v141_v33 = vmul.f32 %v1331_v1, %v1331_v1  ;;  %vm246_vm2 = vcmask 195712  }
  0x15   :  { %v1341_v6 = vld [vmem:[#allocation2 + $0x98] sm:$0xff]  ;;  %v76_v7 = vadd.f32 %v1337_v4, %v1333_v2  ;;  %v1345_v8 = vld [vmem:[#allocation2 + $0x10] sm:$0xff]  ;;  %v1353_v12 = vld [vmem:[#allocation2 + $0xa0] sm:$0xff]  ;;  %v124_v26 = vmul.f32 %v1333_v2, %v1333_v2  ;;  %v125_v27 = vmul.f32 %v1337_v4, %v1337_v4  ;;  %v142_v29 = vmul.f32 %v1339_v5, %v1339_v5 }
  0x16   :  { %v1347_v9 = vld [vmem:[#allocation2 + $0x18] sm:$0xff]  ;;  %101 = vadd.xlane.f32.xlu1 %v100_v3  ;;  %v103_v10 = vadd.f32 %v1341_v6, %v1339_v5  ;;  %v1355_v13 = vld [vmem:[#allocation2 + $0xa8] sm:$0xff]  ;;  %v1357_v14 = vld [vmem:[#allocation2 + $0x20] sm:$0xff]  ;;  %v126_v23 = vmul.f32 %v1345_v8, %v1345_v8  ;;  %v143_v30 = vmul.f32 %v1341_v6, %v1341_v6  ;;  %v180_v35 = vadd.f32 %v141_v33, %v140_v32 }
  0x17   :  { %77 = vadd.xlane.f32.xlu0 %v76_v7  ;;  %v79_v11 = vadd.f32 %v1347_v9, %v1345_v8  ;;  %v1359_v15 = vld [vmem:[#allocation2 + $0x28] sm:$0xff]  ;;  %v106_v16 = vadd.f32 %v1355_v13, %v1353_v12  ;;  %v1365_v18 = vld [vmem:[#allocation2 + $0xb0] sm:$0xff]  ;;  %v1367_v19 = vld [vmem:[#allocation2 + $0xb8] sm:$0xff]  ;;  %v127_v24 = vmul.f32 %v1347_v9, %v1347_v9  ;;  %v156_v31 = vadd.f32 %v125_v27, %v124_v26 }
  0x18   :  { %v82_v17 = vadd.f32 %v1359_v15, %v1357_v14  ;;  %1773 = vst [vmem:[#allocation8_spill] sm:$0xff] %v1365_v18  ;;  %1774 = vst [vmem:[#allocation9_spill] sm:$0xff] %v1367_v19  ;;  %v1369_v20 = vld [vmem:[#allocation2 + $0x30] sm:$0xff]  ;;  %v1371_v21 = vld [vmem:[#allocation2 + $0x38] sm:$0xff]  ;;  %v109_v22 = vadd.f32 %v1367_v19, %v1365_v18  ;;  %v183_v34 = vadd.f32 %v143_v30, %v142_v29  ;;  %vm253_vm3 = vcmask 261312  }
  0x19   :  { %v85_v25 = vadd.f32 %v1371_v21, %v1369_v20  ;;  %v159_v28 = vadd.f32 %v127_v24, %v126_v23  ;;  %v1393_v36 = vld [vmem:[#allocation2 + $0xc0] sm:$0xff]  ;;  %v1395_v37 = vld [vmem:[#allocation2 + $0xc8] sm:$0xff]  ;;  %v144_v41 = vmul.f32 %v1353_v12, %v1353_v12  ;;  %v145_v42 = vmul.f32 %v1355_v13, %v1355_v13  ;;  %v1413_v48 = vld [vmem:[#allocation2 + $0xd0] sm:$0xff] }
  0x1a   :  { %104 = vadd.xlane.f32.xlu1 %v103_v10  ;;  %1775 = vst [vmem:[#allocation10_spill] sm:$0xff] %v1393_v36  ;;  %1776 = vst [vmem:[#allocation11_spill] sm:$0xff] %v1395_v37  ;;  %v1397_v38 = vld [vmem:[#allocation2 + $0x40] sm:$0xff]  ;;  %v1399_v39 = vld [vmem:[#allocation2 + $0x48] sm:$0xff]  ;;  %v112_v40 = vadd.f32 %v1395_v37, %v1393_v36  ;;  %v128_v44 = vmul.f32 %v1357_v14, %v1357_v14  ;;  %v129_v45 = vmul.f32 %v1359_v15, %v1359_v15  ;;  %vm260_vm4 = vcmask 326912  }
  0x1b   :  { %80 = vadd.xlane.f32.xlu0 %v79_v11  ;;  %v88_v43 = vadd.f32 %v1399_v39, %v1397_v38  ;;  %v186_v46 = vadd.f32 %v145_v42, %v144_v41  ;;  %1777 = vst [vmem:[#allocation12_spill] sm:$0xff] %v1413_v48  ;;  %v1415_v49 = vld [vmem:[#allocation2 + $0xd8] sm:$0xff]  ;;  %v1417_v50 = vld [vmem:[#allocation2 + $0x50] sm:$0xff]  ;;  %v146_v53 = vmul.f32 %v1365_v18, %v1365_v18  ;;  %v1433_v60 = vld [vmem:[#allocation2 + $0xe0] sm:$0xff]  ;;  %vm267_vm5 = vcmask 392512  }
  0x1c   :  { %v162_v47 = vadd.f32 %v129_v45, %v128_v44  ;;  %1778 = vst [vmem:[#allocation13_spill] sm:$0xff] %v1415_v49  ;;  %v1419_v51 = vld [vmem:[#allocation2 + $0x58] sm:$0xff]  ;;  %v115_v52 = vadd.f32 %v1415_v49, %v1413_v48  ;;  %v147_v54 = vmul.f32 %v1367_v19, %v1367_v19  ;;  %v130_v56 = vmul.f32 %v1369_v20, %v1369_v20  ;;  %v1435_v61 = vld [vmem:[#allocation2 + $0xe8] sm:$0xff]  ;;  %v1437_v62 = vld [vmem:[#allocation2 + $0x60] sm:$0xff] }
  0x1d   :  { %v91_v55 = vadd.f32 %v1419_v51, %v1417_v50  ;;  %v131_v57 = vmul.f32 %v1371_v21, %v1371_v21  ;;  %1779 = vst [vmem:[#allocation14_spill] sm:$0xff] %v1433_v60  ;;  %1780 = vst [vmem:[#allocation15_spill] sm:$0xff] %v1435_v61  ;;  %v1439_v63 = vld [vmem:[#allocation2 + $0x68] sm:$0xff]  ;;  %v118_v3 = vadd.f32 %v1435_v61, %v1433_v60  ;;  %v1453_v24 = vld [vmem:[#allocation2 + $0xf0] sm:$0xff]  ;;  %vm274_vm6 = vcmask 458112  }
  0x1e   :  { %107 = vadd.xlane.f32.xlu1 %v106_v16  ;;  %v189_v58 = vadd.f32 %v147_v54, %v146_v53  ;;  %v148_v7 = vmul.f32 %v1393_v36, %v1393_v36  ;;  %v149_v10 = vmul.f32 %v1395_v37, %v1395_v37  ;;  %v94_v11 = vadd.f32 %v1439_v63, %v1437_v62  ;;  %v1457_v26 = vld [vmem:[#allocation2 + $0x70] sm:$0xff]  ;;  %v1459_v27 = vld [vmem:[#allocation2 + $0x78] sm:$0xff]  ;;  %v204_v44 = vld [vmem:[%s1757_s6] sm:$0xff] }
  0x1f   :  { %83 = vadd.xlane.f32.xlu0 %v82_v17  ;;  %v165_v59 = vadd.f32 %v131_v57, %v130_v56  ;;  %v132_v16 = vmul.f32 %v1397_v38, %v1397_v38  ;;  %v133_v17 = vmul.f32 %v1399_v39, %v1399_v39  ;;  %1781 = vst [vmem:[#allocation16_spill] sm:$0xff] %v1453_v24  ;;  %v205_v45 = vld [vmem:[%s1757_s6 + $0x8] sm:$0xff]  ;;  %vm281_vm7 = vcmask 523712  }
  0x20   :  { %v150_v29 = vmul.f32 %v1413_v48, %v1413_v48  ;;  %v151_v30 = vmul.f32 %v1415_v49, %v1415_v49  ;;  %v134_v32 = vmul.f32 %v1417_v50, %v1417_v50  ;;  %v135_v33 = vmul.f32 %v1419_v51, %v1419_v51 }
  0x21   :  { %v168_v23 = vadd.f32 %v133_v17, %v132_v16  ;;  %v136_v42 = vmul.f32 %v1437_v62, %v1437_v62  ;;  %v154_v53 = vmul.f32 %v1453_v24, %v1453_v24  ;;  %v138_v56 = vmul.f32 %v1457_v26, %v1457_v26  ;;  %v209_v16 = vld [vmem:[%s1757_s6 + $0x28] sm:$0xff] }
  0x22   :  { %110 = vadd.xlane.f32.xlu1 %v109_v22  ;;  %v192_v22 = vadd.f32 %v149_v10, %v148_v7  ;;  %v171_v41 = vadd.f32 %v135_v33, %v134_v32  ;;  %v139_v57 = vmul.f32 %v1459_v27, %v1459_v27  ;;  %vm322_vm8 = vcmask 1041409  }
  0x23   :  { %86 = vadd.xlane.f32.xlu0 %v85_v25  ;;  %v1455_v25 = vld [vmem:[#allocation2 + $0xf8] sm:$0xff]  ;;  %vm324_vm9 = vcmask 523264   ;;  %vm575_vm10 = vcmask 1041408   ;;  %vm734_vm11 = vcmask 261120   ;;  %vm571_vm12 = vcmask 15360  }
  0x24   :  { %1782 = vst [vmem:[#allocation17_spill] sm:$0xff] %v1455_v25  ;;  %v155_v54 = vmul.f32 %v1455_v25, %v1455_v25  ;;  %v177_v10 = vadd.f32 %v139_v57, %v138_v56 }
  0x26   :  { %160 = vadd.xlane.f32.xlu1 %v159_v28  ;;  %v121_v28 = vadd.f32 %v1455_v25, %v1453_v24  ;;  %v201_v7 = vadd.f32 %v155_v54, %v154_v53  ;;  %v228_v53 = vlaneseq }
  0x27   :  { %157 = vadd.xlane.f32.xlu0 %v156_v31  ;;  %v97_v31 = vadd.f32 %v1459_v27, %v1457_v26 }
  0x28   :  { %v229_v56 = vand.u32 127, %v228_v53 }
  0x2a   :  { %184 = vadd.xlane.f32.xlu1 %v183_v34  ;;  %v195_v34 = vadd.f32 %v151_v30, %v150_v29  ;;  %v1761_v29 = vmov 0.0   ;;  %v276_v48 = vadd.s32 4294967240, %v229_v56 }
  0x2b   :  { %181 = vadd.xlane.f32.xlu0 %v180_v35  ;;  %v152_v35 = vmul.f32 %v1433_v60, %v1433_v60  ;;  %1132 = vmatprep.mubr.msk.f32.mxu0 %vm1266_vm0, %v1761_v29 }
  0x2c   :  { %1151 = vmatprep.mubr.msk.f32.mxu1 %vm1266_vm0, %v1761_v29 }
  0x2e   :  { %113 = vadd.xlane.f32.xlu1 %v112_v40  ;;  %v153_v40 = vmul.f32 %v1435_v61, %v1435_v61 }
  0x2f   :  { %89 = vadd.xlane.f32.xlu0 %v88_v43  ;;  %v137_v43 = vmul.f32 %v1439_v63, %v1439_v63 }
  0x32   :  { %187 = vadd.xlane.f32.xlu1 %v186_v46  ;;  %v1176_v46 = vpack.c.bf16 %v205_v45, %v204_v44 }
  0x33   :  { %163 = vadd.xlane.f32.xlu0 %v162_v47  ;;  %v1760_v47 = vmov 0.0|0.0  }
  0x34   :  { %1175 = vmatprep.subr.bf16.mxu0 %v1760_v47  ;;  %1187 = vmatprep.subr.bf16.mxu1 %v1760_v47 }
  0x35   :  { %1177 = vmatpush3.bf16.msra.mxu0 %v1176_v46  ;;  %1189 = vmatpush3.bf16.msra.mxu1 %v1176_v46 }
  0x36   :  { %116 = vadd.xlane.f32.xlu1 %v115_v52  ;;  %v198_v52 = vadd.f32 %v153_v40, %v152_v35  ;;  %1178 = vmatprep.subr.bf16.mxu0 %v1760_v47 }
  0x37   :  { %92 = vadd.xlane.f32.xlu0 %v91_v55  ;;  %v174_v55 = vadd.f32 %v137_v43, %v136_v42  ;;  %1190 = vmatprep.subr.bf16.mxu1 %v1760_v47 }
  0x3a   :  { %190 = vadd.xlane.f32.xlu1 %v189_v58  ;;  %v206_v58 = vld [vmem:[%s1757_s6 + $0x10] sm:$0xff] }
  0x3b   :  { %166 = vadd.xlane.f32.xlu0 %v165_v59  ;;  %v207_v59 = vld [vmem:[%s1757_s6 + $0x18] sm:$0xff] }
  0x3e   :  { %119 = vadd.xlane.f32.xlu1 %v118_v3  ;;  %v1179_v3 = vpack.c.bf16 %v207_v59, %v206_v58  ;;  %v234_v58 = vadd.s32 4294967288, %v229_v56 }
  0x3f   :  { %95 = vadd.xlane.f32.xlu0 %v94_v11  ;;  %v208_v11 = vld [vmem:[%s1757_s6 + $0x20] sm:$0xff] }
  0x40   :  { %1180 = vmatpush3.bf16.msra.mxu0 %v1179_v3  ;;  %v1182_v17 = vpack.c.bf16 %v209_v16, %v208_v11  ;;  %1192 = vmatpush3.bf16.msra.mxu1 %v1179_v3  ;;  %v241_v3 = vadd.s32 4294967280, %v229_v56  ;;  %v255_v11 = vadd.s32 4294967264, %v229_v56 }
  0x41   :  { %1181 = vmatprep.subr.bf16.mxu0 %v1760_v47  ;;  %1193 = vmatprep.subr.bf16.mxu1 %v1760_v47 }
  0x42   :  { %193 = vadd.xlane.f32.xlu1 %v192_v22  ;;  %v210_v22 = vld [vmem:[%s1757_s6 + $0x30] sm:$0xff] }
  0x43   :  { %169 = vadd.xlane.f32.xlu0 %v168_v23  ;;  %v211_v23 = vld [vmem:[%s1757_s6 + $0x38] sm:$0xff] }
  0x44   :  { %1183 = vmatpush3.bf16.msra.mxu0 %v1182_v17  ;;  %1195 = vmatpush3.bf16.msra.mxu1 %v1182_v17 }
  0x45   :  { %1184 = vmatprep.subr.bf16.mxu0 %v1760_v47  ;;  %1196 = vmatprep.subr.bf16.mxu1 %v1760_v47 }
  0x46   :  { %122 = vadd.xlane.f32.xlu1 %v121_v28  ;;  %v1185_v28 = vpack.c.bf16 %v211_v23, %v210_v22  ;;  %v262_v22 = vadd.s32 4294967256, %v229_v56 }
  0x47   :  { %98 = vadd.xlane.f32.xlu0 %v97_v31 }
  0x48   :  { %1186 = vmatpush3.bf16.msra.mxu0 %v1185_v28  ;;  %1198 = vmatpush3.bf16.msra.mxu1 %v1185_v28 }
  0x49   :  { %1199 = vmatprep.subr.bf16.mxu0 %v1760_v47  ;;  %1154 = vmatprep.subr.mxu1 %v1761_v29  ;;  %v269_v47 = vadd.s32 4294967248, %v229_v56 }
  0x4a   :  { %196 = vadd.xlane.f32.xlu1 %v195_v34 }
  0x4b   :  { %172 = vadd.xlane.f32.xlu0 %v171_v41 }
  0x4e   :  { %199 = vadd.xlane.f32.xlu1 %v198_v52 }
  0x4f   :  { %175 = vadd.xlane.f32.xlu0 %v174_v55 }
  0x52   :  { %202 = vadd.xlane.f32.xlu1 %v201_v7  ;;  %v1539_v7 = vshrl.u32 %v228_v53, 7 }
  0x53   :  { %178 = vadd.xlane.f32.xlu0 %v177_v10  ;;  %v248_v10 = vadd.s32 4294967272, %v229_v56 }
  0x54   :  { %v1544_v17 = vsub.s32 %v234_v58, %v1539_v7  ;;  %v1549_v28 = vsub.s32 %v241_v3, %v1539_v7  ;;  %v1552_v29 = vsub.s32 %v229_v56, %v1539_v7  ;;  %v1558_v25 = vsub.s32 %v255_v11, %v1539_v7 }
  0x55   :  { %v1555_v53 = vsub.s32 %v248_v10, %v1539_v7  ;;  %v1562_v49 = vsub.s32 %v262_v22, %v1539_v7  ;;  %v1567_v10 = vsub.s32 %v269_v47, %v1539_v7 }
  0xa3   :  { %v102_v30 = vpop.xlane.xlu1 %101 }
  0xa4   :  { %v78_v31 = vpop.xlane.xlu0 %77  ;;  %v286_v11 = vrot.slane %v102_v30, %v1552_v29 }
  0xa5   :  { %v233_v22 = vrot.slane %v78_v31, %v1552_v29 }
  0xa7   :  { %v105_v32 = vpop.xlane.xlu1 %104 }
  0xa8   :  { %v81_v33 = vpop.xlane.xlu0 %80  ;;  %v290_v58 = vrot.slane %v105_v32, %v1544_v17 }
  0xa9   :  { %v238_v61 = vrot.slane %v81_v33, %v1544_v17 }
  0xab   :  { %v108_v34 = vpop.xlane.xlu1 %107 }
  0xac   :  { %v84_v35 = vpop.xlane.xlu0 %83  ;;  %v295_v60 = vrot.slane %v108_v34, %v1549_v28  ;;  %v291_v34 = vsel %vm239_vm1, %v290_v58, %v286_v11 }
  0xad   :  { %v245_v19 = vrot.slane %v84_v35, %v1549_v28  ;;  %v1579_v35 = vsub.s32 %v276_v48, %v1539_v7 }
  0xae   :  { %v296_v31 = vsel %vm246_vm2, %v295_v60, %v291_v34 }
  0xaf   :  { %v111_v40 = vpop.xlane.xlu1 %110 }
  0xb0   :  { %v87_v41 = vpop.xlane.xlu0 %86  ;;  %v300_v32 = vrot.slane %v111_v40, %v1555_v53  ;;  %v240_v40 = vsel %vm239_vm1, %v238_v61, %v233_v22 }
  0xb1   :  { %v252_v18 = vrot.slane %v87_v41, %v1555_v53  ;;  %v247_v36 = vsel %vm246_vm2, %v245_v19, %v240_v40 }
  0xb2   :  { %v301_v58 = vsel %vm253_vm3, %v300_v32, %v296_v31 }
  0xb3   :  { %v1527_v42 = vpop.xlane.xlu1 %160 }
  0xb4   :  { %v1529_v43 = vpop.xlane.xlu0 %157  ;;  %v421_v31 = vrot.slane %v1527_v42, %v1544_v17 }
  0xb7   :  { %v1531_v44 = vpop.xlane.xlu1 %184 }
  0xb8   :  { %v1533_v45 = vpop.xlane.xlu0 %181 }
  0xb9   :  { %v456_v34 = vrot.slane %v1533_v45, %v1552_v29 }
  0xbb   :  { %v114_v46 = vpop.xlane.xlu1 %113 }
  0xbc   :  { %v90_v52 = vpop.xlane.xlu0 %89  ;;  %v305_v56 = vrot.slane %v114_v46, %v1558_v25 }
  0xbd   :  { %v259_v47 = vrot.slane %v90_v52, %v1558_v25 }
  0xbe   :  { %v306_v48 = vsel %vm260_vm4, %v305_v56, %v301_v58  ;;  %v1783_v58 = vmov 0.0  }
  0xbf   :  { %v1535_v54 = vpop.xlane.xlu1 %187 }
  0xc0   :  { %v1537_v55 = vpop.xlane.xlu0 %163 }
  0xc3   :  { %v117_v57 = vpop.xlane.xlu1 %116 }
  0xc4   :  { %v93_v59 = vpop.xlane.xlu0 %92  ;;  %v310_v37 = vrot.slane %v117_v57, %v1562_v49  ;;  %v254_v57 = vsel %vm253_vm3, %v252_v18, %v247_v36 }
  0xc5   :  { %v266_v41 = vrot.slane %v93_v59, %v1562_v49  ;;  %v261_v61 = vsel %vm260_vm4, %v259_v47, %v254_v57 }
  0xc6   :  { %v311_v60 = vsel %vm267_vm5, %v310_v37, %v306_v48  ;;  %v460_v37 = vrot.slane %v1531_v44, %v1544_v17  ;;  %v426_v44 = vrot.slane %v1537_v55, %v1549_v28 }
  0xc7   :  { %v1541_v16 = vpop.xlane.xlu1 %190  ;;  %v268_v19 = vsel %vm267_vm5, %v266_v41, %v261_v61  ;;  %v417_v41 = vrot.slane %v1529_v43, %v1552_v29 }
  0xc8   :  { %v1546_v23 = vpop.xlane.xlu0 %166  ;;  %v470_v45 = vrot.slane %v1541_v16, %v1555_v53  ;;  %v461_v43 = vsel %vm239_vm1, %v460_v37, %v456_v34  ;;  %v725_v37 = vld [vmem:[%s1755_s4 + $0x10] sm:$0xff] }
  0xc9   :  { %v431_v42 = vrot.slane %v1546_v23, %v1555_v53  ;;  %v422_v55 = vsel %vm239_vm1, %v421_v31, %v417_v41  ;;  %v1784_v31 = vmov 0.0|0.0   ;;  %v722_v41 = vld [vmem:[%s1752_s1] sm:$0x3] }
  0xca   :  { %v427_v23 = vsel %vm246_vm2, %v426_v44, %v422_v55 }
  0xcb   :  { %v120_v24 = vpop.xlane.xlu1 %119 }
  0xcc   :  { %v96_v3 = vpop.xlane.xlu0 %95  ;;  %v315_v46 = vrot.slane %v120_v24, %v1567_v10 }
  0xcd   :  { %v273_v52 = vrot.slane %v96_v3, %v1567_v10 }
  0xce   :  { %v316_v32 = vsel %vm274_vm6, %v315_v46, %v311_v60  ;;  %v465_v46 = vrot.slane %v1535_v54, %v1549_v28 }
  0xcf   :  { %v194_v33 = vpop.xlane.xlu1 %193  ;;  %v275_v18 = vsel %vm274_vm6, %v273_v52, %v268_v19 }
  0xd0   :  { %v170_v30 = vpop.xlane.xlu0 %169  ;;  %v475_v17 = vrot.slane %v194_v33, %v1558_v25  ;;  %v466_v16 = vsel %vm246_vm2, %v465_v46, %v461_v43 }
  0xd1   :  { %v436_v54 = vrot.slane %v170_v30, %v1558_v25  ;;  %v471_v53 = vsel %vm253_vm3, %v470_v45, %v466_v16 }
  0xd2   :  { %v476_v25 = vsel %vm260_vm4, %v475_v17, %v471_v53 }
  0xd3   :  { %v123_v11 = vpop.xlane.xlu1 %122 }
  0xd4   :  { %v320_v59 = vrot.slane %v123_v11, %v1579_v35  ;;  %v99_v24 = vpop.xlane.xlu0 %98  ;;  %v432_v11 = vsel %vm253_vm3, %v431_v42, %v427_v23  ;;  %v1085_v23 = vld [vmem:[%s1756_s5] ss:$0 sm:$0xff] }
  0xd5   :  { %v280_v22 = vrot.slane %v99_v24, %v1579_v35  ;;  %v437_v61 = vsel %vm260_vm4, %v436_v54, %v432_v11  ;;  %v828_v11 = vsub.s32 0, %v1539_v7 }
  0xd6   :  { %v321_v36 = vsel %vm281_vm7, %v320_v59, %v316_v32 }
  0xd7   :  { %v282_v3 = vsel %vm281_vm7, %v280_v22, %v275_v18  ;;  %v197_v56 = vpop.xlane.xlu1 %196 }
  0xd8   :  { %v173_v47 = vpop.xlane.xlu0 %172  ;;  %v323_v40 = vsel %vm322_vm8, %v321_v36, %v282_v3  ;;  %v480_v52 = vrot.slane %v197_v56, %v1562_v49  ;;  %v570_v3 = vld [vmem:[%s1758_s7] sm:$0x3]  ;;  %v724_v56 = vld [vmem:[%s1755_s4 + $0x8] sm:$0xff] }
  0xd9   :  { %1133 = vmatmul.mubr.msk.f32.vlgmr.msra.gmra.mrb[0].mxu0 %vm324_vm9, %v323_v40  ;;  %v441_v28 = vrot.slane %v173_v47, %v1562_v49  ;;  %v726_v47 = vld [vmem:[%s1755_s4 + $0x18] sm:$0xff] }
  0xda   :  { %1172 = vmatprep.mubr.msk.f32.mxu0 %vm1266_vm0, %v1783_v58  ;;  %v481_v60 = vsel %vm267_vm5, %v480_v52, %v476_v25  ;;  %v1203_v40 = vpack.c.bf16 %v726_v47, %v725_v37 }
  0xdb   :  { %v200_v29 = vpop.xlane.xlu1 %199  ;;  %v442_v24 = vsel %vm267_vm5, %v441_v28, %v437_v61 }
  0xdc   :  { %v176_v57 = vpop.xlane.xlu0 %175  ;;  %v485_v48 = vrot.slane %v200_v29, %v1567_v10 }
  0xdd   :  { %v446_v33 = vrot.slane %v176_v57, %v1567_v10 }
  0xde   :  { %v486_v19 = vsel %vm274_vm6, %v485_v48, %v481_v60 }
  0xdf   :  { %v203_v30 = vpop.xlane.xlu1 %202  ;;  %v447_v10 = vsel %vm274_vm6, %v446_v33, %v442_v24  ;;  %v1088_v33 = vld [vmem:[%s1754_s3] ss:$0 sm:$0xff] }
  0xe0   :  { %v490_v59 = vrot.slane %v203_v30, %v1579_v35  ;;  %v179_v49 = vpop.xlane.xlu0 %178 }
  0xe1   :  { %v451_v32 = vrot.slane %v179_v49, %v1579_v35  ;;  %v723_v35 = vld [vmem:[%s1755_s4] sm:$0xff] }
  0xe2   :  { %v491_v22 = vsel %vm281_vm7, %v490_v59, %v486_v19  ;;  %v1200_v34 = vpack.c.bf16 %v724_v56, %v723_v35  ;;  %v863_v19 = vsub.s32 1, %v1539_v7 }
  0xe3   :  { %v452_v18 = vsel %vm281_vm7, %v451_v32, %v447_v10 }
  0xe4   :  { %v492_v36 = vsel %vm322_vm8, %v491_v22, %v452_v18  ;;  %1201 = vmatpush3.bf16.msra.mxu0 %v1200_v34 }
  0xe5   :  { %1152 = vmatmul.mubr.msk.f32.vlgmr.msra.gmra.mrb[0].mxu1 %vm324_vm9, %v492_v36  ;;  %1202 = vmatprep.subr.bf16.mxu0 %v1784_v31 }
  0xe6   :  { %1156 = vmatprep.mubr.msk.f32.mxu1 %vm1266_vm0, %v1783_v58  ;;  %1155 = vmatpush3.msk.msra.mxu1 %vm575_vm10, %v570_v3 }
  0xe7   :  { %1159 = vmatprep.subr.mxu1 %v1783_v58 }
  0xe8   :  { %1204 = vmatpush3.bf16.msra.mxu0 %v1203_v40 }
  0xeb   :  { %1173 = vmatmul.mubr.msk.f32.vlgmr.msra.gmra.mrb[2].mxu0 %vm734_vm11, %v722_v41 }
 0x1ac   :  { %v393_v46 = vpop.f32.mrb[0].mxu0 }
 0x1ad   :  { %v397_v44 = vmul.f32 0.00012207031, %v393_v46  ;;  %v1134_v45 = vpop.f32.mrb[1].mxu0 }
 0x1af   :  { %1157 = vmatmul.mubr.msk.f32.vlgmr.msra.gmra.mrb[2].mxu1 %vm571_vm12, %v397_v44  ;;  %v566_v17 = vmul.f32 %v397_v44, %v397_v44 }
 0x1b0   :  { %1160 = vmatpush3.msk.msra.mxu1 %vm575_vm10, %v570_v3  ;;  %1161 = vmatprep.mubr.msk.f32.mxu1 %vm1266_vm0, %v1783_v58  ;;  %v1087_v58 = vld [vmem:[%s1753_s2] ss:$0 sm:$0xff]  ;;  %s1268_s2 = smov [#allocation5]  }
 0x1b1   :  { %s1067_s3 = sshll.u32 %s1268_s2, 4  ;;  %s1068_s3 = int_to_ptr.vmem [resolvable:$true] %s1067_s3 }
 0x1b2   :  { %s1236_s5 = scalar_lea.vmem %s1068_s3, 4096  ;;  %p1241_p9 = scmp.lt.s32.totalorder %s1068_s3, %s1068_s3 }
 0x1b3   :  { %p1237_p8 = scmp.ne.s32.totalorder %s1068_s3, %s1236_s5  ;;  %p1242_p10 = scmp.lt.s32.totalorder %s1236_s5, %s1236_s5 }
 0x1b5   :  { %p1243_p11 = por %p1242_p10, %p1241_p9 }
 0x1b7   :  { %p1244_p12 = pnand %p1243_p11, %p1237_p8 }
 0x1b8   :  { %v561_v42 = vpop.f32.mrb[0].mxu1 }
 0x1b9   :  { %v565_v29 = vmul.f32 0.00012207031, %v561_v42  ;;  %v1153_v43 = vpop.f32.mrb[1].mxu1 }
 0x1bb   :  { %v567_v54 = vsub.f32 %v565_v29, %v566_v17 }
 0x1bd   :  { %v568_v52 = vadd.f32 1e-05, %v567_v54 }
 0x1be   :  { %v804_v55 = vpop.f32.mrb[2].mxu0 }
 0x1bf   :  { %1212 = vrsqrt.f32 %v568_v52  ;;  %v1174_v16 = vpop.f32.mrb[3].mxu0  ;;  %v805_v53 = vadd.f32 %v1085_v23, %v804_v55 }
 0x1c1   :  { %v823_v61 = vadd.f32 %v1088_v33, %v805_v53 }
 0x1c9   :  { %v1213_v57 = vpop.eup %1212 }
 0x1ca   :  { %1162 = vmatmul.mubr.msk.f32.vlgmr.msra.gmra.mrb[4].mxu1 %vm571_vm12, %v1213_v57 }
 0x282   :  { %v645_v28 = vpop.f32.mrb[2].mxu1 }
 0x283   :  { %v1158_v48 = vpop.f32.mrb[3].mxu1 }
 0x29d   :  { %v718_v25 = vpop.f32.mrb[4].mxu1 }
 0x29e   :  { %v815_v30 = vmul.f32 %v1087_v58, %v718_v25  ;;  %v1163_v60 = vpop.f32.mrb[5].mxu1 }
 0x2a0   :  { %v824_v59 = vmul.f32 %v815_v30, %v645_v28  ;;  %v829_v49 = vrot.slane %v815_v30, %v828_v11  ;;  %v864_v32 = vrot.slane %v815_v30, %v863_v19 }
 0x2a2   :  { %v825_v24 = vsub.f32 %v823_v61, %v824_v59  ;;  %835 = vbcast.lane.b32.xlu1 %v829_v49, 264  ;;  %831 = vbcast.lane.b32.xlu0 %v829_v49, 256 }
 0x2a4   :  { %v931_v10 = vrot.slane %v825_v24, %v828_v11  ;;  %v966_v7 = vrot.slane %v825_v24, %v863_v19 }
 0x2a6   :  { %839 = vbcast.lane.b32.xlu1 %v829_v49, 272  ;;  %847 = vbcast.lane.b32.xlu0 %v829_v49, 288 }
 0x2aa   :  { %843 = vbcast.lane.b32.xlu1 %v829_v49, 280  ;;  %855 = vbcast.lane.b32.xlu0 %v829_v49, 304 }
 0x2ae   :  { %851 = vbcast.lane.b32.xlu1 %v829_v49, 296  ;;  %866 = vbcast.lane.b32.xlu0 %v864_v32, 256 }
 0x2b2   :  { %859 = vbcast.lane.b32.xlu1 %v829_v49, 312  ;;  %874 = vbcast.lane.b32.xlu0 %v864_v32, 272 }
 0x2b6   :  { %870 = vbcast.lane.b32.xlu1 %v864_v32, 264  ;;  %882 = vbcast.lane.b32.xlu0 %v864_v32, 288 }
 0x2ba   :  { %878 = vbcast.lane.b32.xlu1 %v864_v32, 280  ;;  %890 = vbcast.lane.b32.xlu0 %v864_v32, 304 }
 0x2be   :  { %886 = vbcast.lane.b32.xlu1 %v864_v32, 296  ;;  %933 = vbcast.lane.b32.xlu0 %v931_v10, 256 }
 0x2c2   :  { %894 = vbcast.lane.b32.xlu1 %v864_v32, 312  ;;  %941 = vbcast.lane.b32.xlu0 %v931_v10, 272 }
 0x2c6   :  { %937 = vbcast.lane.b32.xlu1 %v931_v10, 264  ;;  %949 = vbcast.lane.b32.xlu0 %v931_v10, 288 }
 0x2ca   :  { %945 = vbcast.lane.b32.xlu1 %v931_v10, 280  ;;  %957 = vbcast.lane.b32.xlu0 %v931_v10, 304 }
 0x2ce   :  { %953 = vbcast.lane.b32.xlu1 %v931_v10, 296  ;;  %968 = vbcast.lane.b32.xlu0 %v966_v7, 256 }
 0x2d2   :  { %961 = vbcast.lane.b32.xlu1 %v931_v10, 312  ;;  %976 = vbcast.lane.b32.xlu0 %v966_v7, 272 }
 0x2d6   :  { %972 = vbcast.lane.b32.xlu1 %v966_v7, 264  ;;  %984 = vbcast.lane.b32.xlu0 %v966_v7, 288 }
 0x2da   :  { %980 = vbcast.lane.b32.xlu1 %v966_v7, 280  ;;  %992 = vbcast.lane.b32.xlu0 %v966_v7, 304 }
 0x2de   :  { %988 = vbcast.lane.b32.xlu1 %v966_v7, 296 }
 0x2e2   :  { %996 = vbcast.lane.b32.xlu1 %v966_v7, 312 }
 0x314   :  { %v836_v22 = vpop.permute.xlu1 %835  ;;  %v832_v18 = vpop.permute.xlu0 %831 }
 0x315   :  { %v896_v45 = vmul.f32 %v832_v18, %v1333_v2  ;;  %v897_v42 = vmul.f32 %v832_v18, %v1337_v4  ;;  %v898_v2 = vmul.f32 %v836_v22, %v1345_v8  ;;  %v899_v4 = vmul.f32 %v836_v22, %v1347_v9 }
 0x318   :  { %v840_v36 = vpop.permute.xlu1 %839  ;;  %v848_v3 = vpop.permute.xlu0 %847 }
 0x319   :  { %v900_v52 = vmul.f32 %v840_v36, %v1357_v14  ;;  %v901_v57 = vmul.f32 %v840_v36, %v1359_v15  ;;  %v904_v23 = vmul.f32 %v848_v3, %v1397_v38  ;;  %v905_v53 = vmul.f32 %v848_v3, %v1399_v39 }
 0x31c   :  { %v844_v35 = vpop.permute.xlu1 %843  ;;  %v856_v56 = vpop.permute.xlu0 %855 }
 0x31d   :  { %v902_v30 = vmul.f32 %v844_v35, %v1369_v20  ;;  %v903_v61 = vmul.f32 %v844_v35, %v1371_v21  ;;  %v908_v8 = vmul.f32 %v856_v56, %v1437_v62  ;;  %v909_v9 = vmul.f32 %v856_v56, %v1439_v63 }
 0x320   :  { %v852_v37 = vpop.permute.xlu1 %851  ;;  %v867_v34 = vpop.permute.xlu0 %866 }
 0x321   :  { %v906_v19 = vmul.f32 %v852_v37, %v1417_v50  ;;  %v907_v20 = vmul.f32 %v852_v37, %v1419_v51  ;;  %v912_v21 = vmul.f32 %v867_v34, %v1329_v0  ;;  %v913_v62 = vmul.f32 %v867_v34, %v1331_v1 }
 0x324   :  { %v860_v47 = vpop.permute.xlu1 %859  ;;  %v875_v40 = vpop.permute.xlu0 %874 }
 0x325   :  { %v910_v36 = vmul.f32 %v860_v47, %v1457_v26  ;;  %v911_v50 = vmul.f32 %v860_v47, %v1459_v27  ;;  %v916_v51 = vmul.f32 %v875_v40, %v1353_v12  ;;  %v917_v0 = vmul.f32 %v875_v40, %v1355_v13  ;;  %v1785_v27 = vld [vmem:[#allocation10_spill] sm:$0xff]  ;;  %v1786_v13 = vld [vmem:[#allocation11_spill] sm:$0xff] }
 0x328   :  { %v1680_v31 = vpop.permute.xlu1 %870  ;;  %v1682_v41 = vpop.permute.xlu0 %882 }
 0x329   :  { %v915_v26 = vmul.f32 %v1680_v31, %v1341_v6  ;;  %v920_v12 = vmul.f32 %v1682_v41, %v1785_v27  ;;  %v921_v47 = vmul.f32 %v1682_v41, %v1786_v13  ;;  %v1788_v6 = vld [vmem:[#allocation9_spill] sm:$0xff]  ;;  %v1790_v41 = vld [vmem:[#allocation15_spill] sm:$0xff] }
 0x32c   :  { %v1684_v46 = vpop.permute.xlu1 %878  ;;  %v1686_v44 = vpop.permute.xlu0 %890 }
 0x330   :  { %v1690_v17 = vpop.permute.xlu1 %886  ;;  %v934_v29 = vpop.permute.xlu0 %933 }
 0x331   :  { %v998_v43 = vadd.f32 %v934_v29, %v896_v45  ;;  %v999_v54 = vadd.f32 %v934_v29, %v897_v42  ;;  %v914_v45 = vmul.f32 %v1680_v31, %v1339_v5  ;;  %v1787_v5 = vld [vmem:[#allocation8_spill] sm:$0xff]  ;;  %v919_v31 = vmul.f32 %v1684_v46, %v1788_v6 }
 0x333   :  { %1030 = vst [vmem:[#allocation5] sm:$0xff] %v998_v43  ;;  %1031 = vst [vmem:[#allocation5 + $0x8] sm:$0xff] %v999_v54 }
 0x334   :  { %v1694_v55 = vpop.permute.xlu1 %894  ;;  %v942_v16 = vpop.permute.xlu0 %941 }
 0x335   :  { %v1002_v28 = vadd.f32 %v942_v16, %v900_v52  ;;  %v1003_v48 = vadd.f32 %v942_v16, %v901_v57  ;;  %v918_v57 = vmul.f32 %v1684_v46, %v1787_v5  ;;  %v1789_v16 = vld [vmem:[#allocation14_spill] sm:$0xff]  ;;  %v1792_v46 = vld [vmem:[#allocation13_spill] sm:$0xff] }
 0x337   :  { %1034 = vst [vmem:[#allocation5 + $0x20] sm:$0xff] %v1002_v28  ;;  %1035 = vst [vmem:[#allocation5 + $0x28] sm:$0xff] %v1003_v48  ;;  %v924_v28 = vmul.f32 %v1686_v44, %v1789_v16  ;;  %v925_v48 = vmul.f32 %v1686_v44, %v1790_v41 }
 0x338   :  { %v938_v14 = vpop.permute.xlu1 %937  ;;  %v950_v58 = vpop.permute.xlu0 %949 }
 0x339   :  { %v1000_v15 = vadd.f32 %v938_v14, %v898_v2  ;;  %v1001_v33 = vadd.f32 %v938_v14, %v899_v4  ;;  %v1006_v11 = vadd.f32 %v950_v58, %v904_v23  ;;  %v1007_v25 = vadd.f32 %v950_v58, %v905_v53 }
 0x33b   :  { %1032 = vst [vmem:[#allocation5 + $0x10] sm:$0xff] %v1000_v15  ;;  %1033 = vst [vmem:[#allocation5 + $0x18] sm:$0xff] %v1001_v33  ;;  %v1791_v15 = vld [vmem:[#allocation12_spill] sm:$0xff] }
 0x33c   :  { %1038 = vst [vmem:[#allocation5 + $0x40] sm:$0xff] %v1006_v11  ;;  %1039 = vst [vmem:[#allocation5 + $0x48] sm:$0xff] %v1007_v25  ;;  %v946_v38 = vpop.permute.xlu1 %945  ;;  %v958_v39 = vpop.permute.xlu0 %957  ;;  %v922_v33 = vmul.f32 %v1690_v17, %v1791_v15  ;;  %v923_v11 = vmul.f32 %v1690_v17, %v1792_v46 }
 0x33d   :  { %v1004_v60 = vadd.f32 %v946_v38, %v902_v30  ;;  %v1005_v59 = vadd.f32 %v946_v38, %v903_v61  ;;  %v1010_v49 = vadd.f32 %v958_v39, %v908_v8  ;;  %v1011_v24 = vadd.f32 %v958_v39, %v909_v9  ;;  %v1793_v61 = vld [vmem:[#allocation16_spill] sm:$0xff]  ;;  %v1794_v9 = vld [vmem:[#allocation17_spill] sm:$0xff] }
 0x33e   :  { %v926_v8 = vmul.f32 %v1694_v55, %v1793_v61  ;;  %v927_v38 = vmul.f32 %v1694_v55, %v1794_v9 }
 0x33f   :  { %1036 = vst [vmem:[#allocation5 + $0x30] sm:$0xff] %v1004_v60  ;;  %1037 = vst [vmem:[#allocation5 + $0x38] sm:$0xff] %v1005_v59 }
 0x340   :  { %1042 = vst [vmem:[#allocation5 + $0x60] sm:$0xff] %v1010_v49  ;;  %1043 = vst [vmem:[#allocation5 + $0x68] sm:$0xff] %v1011_v24  ;;  %v954_v63 = vpop.permute.xlu1 %953  ;;  %v969_v32 = vpop.permute.xlu0 %968 }
 0x341   :  { %v1008_v10 = vadd.f32 %v954_v63, %v906_v19  ;;  %v1009_v7 = vadd.f32 %v954_v63, %v907_v20  ;;  %v1014_v22 = vadd.f32 %v969_v32, %v912_v21  ;;  %v1015_v18 = vadd.f32 %v969_v32, %v913_v62 }
 0x343   :  { %1040 = vst [vmem:[#allocation5 + $0x50] sm:$0xff] %v1008_v10  ;;  %1041 = vst [vmem:[#allocation5 + $0x58] sm:$0xff] %v1009_v7 }
 0x344   :  { %1046 = vst [vmem:[#allocation5 + $0x80] sm:$0xff] %v1014_v22  ;;  %1047 = vst [vmem:[#allocation5 + $0x88] sm:$0xff] %v1015_v18  ;;  %v962_v1 = vpop.permute.xlu1 %961  ;;  %v977_v3 = vpop.permute.xlu0 %976 }
 0x345   :  { %v1012_v35 = vadd.f32 %v962_v1, %v910_v36  ;;  %v1013_v56 = vadd.f32 %v962_v1, %v911_v50  ;;  %v1018_v37 = vadd.f32 %v977_v3, %v916_v51  ;;  %v1019_v34 = vadd.f32 %v977_v3, %v917_v0 }
 0x347   :  { %1044 = vst [vmem:[#allocation5 + $0x70] sm:$0xff] %v1012_v35  ;;  %1045 = vst [vmem:[#allocation5 + $0x78] sm:$0xff] %v1013_v56 }
 0x348   :  { %1050 = vst [vmem:[#allocation5 + $0xa0] sm:$0xff] %v1018_v37  ;;  %1051 = vst [vmem:[#allocation5 + $0xa8] sm:$0xff] %v1019_v34  ;;  %v973_v40 = vpop.permute.xlu1 %972  ;;  %v985_v42 = vpop.permute.xlu0 %984 }
 0x349   :  { %v1016_v29 = vadd.f32 %v973_v40, %v914_v45  ;;  %v1017_v43 = vadd.f32 %v973_v40, %v915_v26  ;;  %v1022_v54 = vadd.f32 %v985_v42, %v920_v12  ;;  %v1023_v52 = vadd.f32 %v985_v42, %v921_v47 }
 0x34b   :  { %1048 = vst [vmem:[#allocation5 + $0x90] sm:$0xff] %v1016_v29  ;;  %1049 = vst [vmem:[#allocation5 + $0x98] sm:$0xff] %v1017_v43 }
 0x34c   :  { %1054 = vst [vmem:[#allocation5 + $0xc0] sm:$0xff] %v1022_v54  ;;  %1055 = vst [vmem:[#allocation5 + $0xc8] sm:$0xff] %v1023_v52  ;;  %v981_v2 = vpop.permute.xlu1 %980  ;;  %v993_v4 = vpop.permute.xlu0 %992 }
 0x34d   :  { %v1020_v23 = vadd.f32 %v981_v2, %v918_v57  ;;  %v1021_v53 = vadd.f32 %v981_v2, %v919_v31  ;;  %v1026_v14 = vadd.f32 %v993_v4, %v924_v28  ;;  %v1027_v58 = vadd.f32 %v993_v4, %v925_v48 }
 0x34f   :  { %1052 = vst [vmem:[#allocation5 + $0xb0] sm:$0xff] %v1020_v23  ;;  %1053 = vst [vmem:[#allocation5 + $0xb8] sm:$0xff] %v1021_v53 }
 0x350   :  { %1058 = vst [vmem:[#allocation5 + $0xe0] sm:$0xff] %v1026_v14  ;;  %1059 = vst [vmem:[#allocation5 + $0xe8] sm:$0xff] %v1027_v58  ;;  %v989_v44 = vpop.permute.xlu1 %988 }
 0x351   :  { %v1024_v25 = vadd.f32 %v989_v44, %v922_v33  ;;  %v1025_v30 = vadd.f32 %v989_v44, %v923_v11 }
 0x353   :  { %1056 = vst [vmem:[#allocation5 + $0xd0] sm:$0xff] %v1024_v25  ;;  %1057 = vst [vmem:[#allocation5 + $0xd8] sm:$0xff] %v1025_v30 }
 0x354   :  { %v997_v39 = vpop.permute.xlu1 %996 }
 0x355   :  { %v1028_v60 = vadd.f32 %v997_v39, %v926_v8  ;;  %v1029_v17 = vadd.f32 %v997_v39, %v927_v38 }
 0x357   :  { %1060 = vst [vmem:[#allocation5 + $0xf0] sm:$0xff] %v1028_v60  ;;  %1061 = vst [vmem:[#allocation5 + $0xf8] sm:$0xff] %v1029_v17 }
 0x358   :  { %1247 = shalt.err (!%p1244_p12)
}
 0x359   :  { %s1248_s29 = scalar_lea.hbm %s1759_s8, 4096 }
 0x35a   :  { %p1249_p13 = scmp.ne.s32.totalorder %s1759_s8, %s1248_s29  ;;  %p1252_p0 = scmp.lt.u32.totalorder %s1248_s29, %s1759_s8 }
 0x35c   :  { %p1254_p1 = pnand %p1252_p0, %p1249_p13 }
 0x35e   :  { %1257 = shalt.err (!%p1254_p1)
}
 0x35f   :  { %1073 = dma.vmem_to_hbm [thread:$0]  %s1068_s3, 4096, %s1759_s8, [#allocation4], %s1263_s15, %s1263_s15, %s1264_s16  }
 0x360   :  { %1260 = dma.done.wait [#allocation4], 4096  }
 0x361   :  { %1261 = vsyncadd [#allocation4], 4294963200 }
 0x362   :  { %1077 = vsyncpa [#allocation3], 1 }
 0x363   :  { %1078 = vsyncpa [#allocation4], 1 }

</bundles_post_ra>
